<compile_context>
chip_gen: v6e
topology: v6e:2x2x1
jax: 0.10.0
libtpu: 0.0.40
codegen_flags: <defaults>
</compile_context>

<pallas_src>
import jax
import jax.numpy as jnp
from jax.experimental import pallas as pl
from jax.experimental.pallas import tpu as pltpu


def _round_up(x, m):
    return ((x + m - 1) // m) * m


def _asin_unit(z):
    """arcsin(z) for z in [0, 1] via A&S 4.4.46 (|error| <= 2e-8)."""
    p = jnp.full_like(z, -0.0012624911)
    for c in (0.0066700901, -0.0170881256, 0.0308918810,
              -0.0501743046, 0.0889789874, -0.2145988016, 1.5707963050):
        p = p * z + c
    return 1.5707963267948966 - jnp.sqrt(jnp.maximum(1.0 - z, 0.0)) * p


def prompt_forward(x, embed, weight, *, tile_n=None):
    """weight * mean( 2 * arcsin(||x_hat - e_hat|| / 2)^2 ) over all (n, m) pairs."""
    x = jnp.asarray(x, jnp.float32)
    embed = jnp.asarray(embed, jnp.float32)
    N, D = x.shape
    M, D2 = embed.shape
    assert D == D2, "feature dims must match"

    # Large N tiles: amortize per-grid-step overhead and fill MXU/lane width.
    if tile_n is None:
        tile_n = min(512, _round_up(max(N, 1), 128))
    else:
        tile_n = _round_up(max(int(tile_n), 8), 8)

    n_tiles = pl.cdiv(N, tile_n)
    n_pad = n_tiles * tile_n
    if n_pad != N:
        x = jnp.pad(x, ((0, n_pad - N), (0, 0)))

    # Embed normalization hoisted out of the grid loop (constant block).
    en = embed / jnp.maximum(
        jnp.sqrt(jnp.sum(embed * embed, axis=-1, keepdims=True)), 1e-12)

    # sign(w) * |w| / (N*M) == w / (N*M): single SMEM scalar.
    w = jnp.asarray(weight, jnp.float32)
    scale = (w / jnp.float32(N * M)).reshape((1,))

    def kernel(scale_ref, x_ref, en_ref, out_ref, acc_ref):
        i = pl.program_id(0)

        @pl.when(i == 0)
        def _():
            acc_ref[...] = jnp.zeros_like(acc_ref)

        x_t = x_ref[...]                               # (tile_n, D)
        e_n = en_ref[...]                              # (M, D), already unit-norm

        # F.normalize eps=1e-12 on the norm  <=>  1e-24 on the sum of squares.
        ssq = jnp.sum(x_t * x_t, axis=-1, keepdims=True)
        xn = x_t * jax.lax.rsqrt(jnp.maximum(ssq, 1e-24))

        # Lane-dense (M, tile_n) output: big dimension on lanes.
        cos = jax.lax.dot_general(
            e_n, xn, (((1,), (1,)), ((), ())),
            preferred_element_type=jnp.float32)        # (M, tile_n)

        sq = jnp.clip(2.0 - 2.0 * cos, 0.0, 4.0)       # ||a-b||^2 for unit vecs
        z = jnp.minimum(0.5 * jnp.sqrt(sq), 1.0)       # arcsin argument in [0, 1]
        a = _asin_unit(z)
        dists = 2.0 * a * a                            # (M, tile_n)

        # Mask out zero-padded rows (lane j -> global row i*tile_n + j).
        col = jax.lax.broadcasted_iota(jnp.int32, dists.shape, 1) + i * tile_n
        dists = jnp.where(col < N, dists, 0.0)

        # Wide elementwise accumulate; defer reductions to the epilogue.
        acc_ref[...] += dists

        @pl.when(i == pl.num_programs(0) - 1)
        def _():
            total = jnp.sum(acc_ref[...], axis=1, keepdims=True)   # (M, 1)
            total = jnp.sum(total, axis=0, keepdims=True)          # (1, 1)
            out_ref[...] = scale_ref[0] * total

    out = pl.pallas_call(
        kernel,
        grid=(n_tiles,),
        in_specs=[
            pl.BlockSpec(memory_space=pltpu.MemorySpace.SMEM),     # scale = w / (N*M)
            pl.BlockSpec((tile_n, D), lambda i: (i, 0)),           # input tile
            pl.BlockSpec((M, D), lambda i: (0, 0)),                # normalized embed table
        ],
        out_specs=pl.BlockSpec((1, 1), lambda i: (0, 0)),          # scalar result
        out_shape=jax.ShapeDtypeStruct((1, 1), jnp.float32),
        scratch_shapes=[pltpu.VMEM((M, tile_n), jnp.float32)],     # wide accumulator
        compiler_params=pltpu.CompilerParams(
            dimension_semantics=("arbitrary",),                    # reduction over N tiles
            vmem_limit_bytes=48 * 1024 * 1024),
    )(scale, x, en)
    return out[0, 0]


def prompt_reference(x, embed, weight):
    """Pure-JAX reference mirroring the PyTorch forward."""
    w = jnp.asarray(weight, jnp.float32)
    xin = x[:, None, :]
    em = embed[None, :, :]

    def l2norm(v):
        n = jnp.sqrt(jnp.sum(v * v, axis=2, keepdims=True))
        return v / jnp.maximum(n, 1e-12)

    d = jnp.sqrt(jnp.sum((l2norm(xin) - l2norm(em)) ** 2, axis=2))
    dists = 2.0 * jnp.arcsin(d / 2.0) ** 2
    dists = dists * jnp.sign(w)
    return jnp.abs(w) * jnp.mean(dists)


if __name__ == "__main__":
    key = jax.random.PRNGKey(0)
    kx, ke = jax.random.split(key)

    # N input embeddings (e.g. cutouts), M prompt embeddings, feature dim D.
    # N is deliberately NOT a multiple of the tile size to exercise the pad/mask path.
    N, M, D = 48, 4, 64
    x = jax.random.normal(kx, (N, D), dtype=jnp.float32)
    embed = jax.random.normal(ke, (M, D), dtype=jnp.float32)
    weight = -0.5                # exercises sign()/abs(); `stop` only affects grads

    out = prompt_forward(x, embed, weight)
    out = jax.block_until_ready(out)

    ref = prompt_reference(x, embed, weight)
    assert jnp.allclose(out, ref, atol=1e-4, rtol=1e-4), (float(out), float(ref))

    print("KERNEL_OK")
</pallas_src>

<mosaic_0001>
module attributes {stable_mosaic.version = 11 : i64} {
  func.func @kernel(%arg0: i32, %arg1: memref<1xf32, #tpu.memory_space<smem>>, %arg2: memref<128x64xf32, #tpu.memory_space<vmem>>, %arg3: memref<4x64xf32, #tpu.memory_space<vmem>>, %arg4: memref<1x1xf32, #tpu.memory_space<vmem>>, %arg5: memref<4x128xf32, #tpu.memory_space<vmem>>) attributes {dimension_semantics = [#tpu.dimension_semantics<arbitrary>], iteration_bounds = array<i64: 1>, scalar_prefetch = 0 : i64, scratch_operands = 1 : i64, tpu.core_type = #tpu.core_type<tc>, window_params = [{transform_indices = @transform_0, window_bounds = array<i64: 1>}, {transform_indices = @transform_1, window_bounds = array<i64: 128, 64>}, {pipeline_mode = #tpu.pipeline_mode<synchronous>, transform_indices = @transform_2, window_bounds = array<i64: 4, 64>}, {pipeline_mode = #tpu.pipeline_mode<synchronous>, transform_indices = @transform_3, window_bounds = array<i64: 1, 1>}]} {
    %c0_i32 = arith.constant 0 : i32
    %0 = arith.cmpi eq, %arg0, %c0_i32 : i32
    %1 = arith.extui %0 : i1 to i32
    %c0_i32_0 = arith.constant 0 : i32
    %2 = arith.cmpi ne, %1, %c0_i32_0 : i32
    scf.if %2 {
      %cst_31 = arith.constant 0.000000e+00 : f32
      %74 = vector.broadcast %cst_31 : f32 to vector<4x128xf32>
      %c0_32 = arith.constant 0 : index
      %c0_33 = arith.constant 0 : index
      %75 = vector.load %arg5[%c0_32, %c0_33] : memref<4x128xf32, #tpu.memory_space<vmem>>, vector<4x128xf32>
      tpu.vector_store %arg5[%c0_32, %c0_33], %74 {strides = array<i32>} : memref<4x128xf32, #tpu.memory_space<vmem>>, vector<4x128xf32>,
    } else {
    }
    %c0 = arith.constant 0 : index
    %c0_1 = arith.constant 0 : index
    %3 = vector.load %arg2[%c0, %c0_1] : memref<128x64xf32, #tpu.memory_space<vmem>>, vector<128x64xf32>
    %c0_2 = arith.constant 0 : index
    %c0_3 = arith.constant 0 : index
    %4 = vector.load %arg3[%c0_2, %c0_3] : memref<4x64xf32, #tpu.memory_space<vmem>>, vector<4x64xf32>
    %5 = arith.mulf %3, %3 : vector<128x64xf32>
    %cst = arith.constant dense<0.000000e+00> : vector<128xf32>
    %6 = vector.multi_reduction <add>, %5, %cst [1] : vector<128x64xf32> to vector<128xf32>
    %7 = vector.shape_cast %6 : vector<128xf32> to vector<128x1xf32>
    %cst_4 = arith.constant 1.000000e-24 : f32
    %8 = vector.broadcast %cst_4 : f32 to vector<128x1xf32>
    %9 = arith.maximumf %7, %8 : vector<128x1xf32>
    %10 = math.rsqrt %9 : vector<128x1xf32>
    %11 = vector.broadcast %10 : vector<128x1xf32> to vector<128x64xf32>
    %12 = arith.mulf %3, %11 : vector<128x64xf32>
    %cst_5 = arith.constant dense<0.000000e+00> : vector<4x128xf32>
    %13 = tpu.matmul %4, %12, %cst_5 {dimension_numbers = #tpu.dot_dimension_numbers<[1], [1], [0], [0], [0, 0, 1, 0], [], []>} : vector<4x64xf32>, vector<128x64xf32>, vector<4x128xf32> -> vector<4x128xf32>
    %cst_6 = arith.constant 2.000000e+00 : f32
    %14 = vector.broadcast %cst_6 : f32 to vector<4x128xf32>
    %15 = arith.mulf %14, %13 : vector<4x128xf32>
    %cst_7 = arith.constant 2.000000e+00 : f32
    %16 = vector.broadcast %cst_7 : f32 to vector<4x128xf32>
    %17 = arith.subf %16, %15 : vector<4x128xf32>
    %cst_8 = arith.constant 0.000000e+00 : f32
    %cst_9 = arith.constant 4.000000e+00 : f32
    %18 = vector.broadcast %cst_8 : f32 to vector<4x128xf32>
    %19 = arith.maximumf %18, %17 : vector<4x128xf32>
    %20 = vector.broadcast %cst_9 : f32 to vector<4x128xf32>
    %21 = arith.minimumf %20, %19 : vector<4x128xf32>
    %22 = math.sqrt %21 : vector<4x128xf32>
    %cst_10 = arith.constant 5.000000e-01 : f32
    %23 = vector.broadcast %cst_10 : f32 to vector<4x128xf32>
    %24 = arith.mulf %23, %22 : vector<4x128xf32>
    %cst_11 = arith.constant 1.000000e+00 : f32
    %25 = vector.broadcast %cst_11 : f32 to vector<4x128xf32>
    %26 = arith.minimumf %24, %25 : vector<4x128xf32>
    %cst_12 = arith.constant -0.0012624911 : f32
    %27 = vector.broadcast %cst_12 : f32 to vector<4x128xf32>
    %28 = arith.mulf %27, %26 : vector<4x128xf32>
    %cst_13 = arith.constant 6.670090e-03 : f32
    %29 = vector.broadcast %cst_13 : f32 to vector<4x128xf32>
    %30 = arith.addf %28, %29 : vector<4x128xf32>
    %31 = arith.mulf %30, %26 : vector<4x128xf32>
    %cst_14 = arith.constant -0.0170881264 : f32
    %32 = vector.broadcast %cst_14 : f32 to vector<4x128xf32>
    %33 = arith.addf %31, %32 : vector<4x128xf32>
    %34 = arith.mulf %33, %26 : vector<4x128xf32>
    %cst_15 = arith.constant 0.0308918804 : f32
    %35 = vector.broadcast %cst_15 : f32 to vector<4x128xf32>
    %36 = arith.addf %34, %35 : vector<4x128xf32>
    %37 = arith.mulf %36, %26 : vector<4x128xf32>
    %cst_16 = arith.constant -0.0501743034 : f32
    %38 = vector.broadcast %cst_16 : f32 to vector<4x128xf32>
    %39 = arith.addf %37, %38 : vector<4x128xf32>
    %40 = arith.mulf %39, %26 : vector<4x128xf32>
    %cst_17 = arith.constant 0.0889789909 : f32
    %41 = vector.broadcast %cst_17 : f32 to vector<4x128xf32>
    %42 = arith.addf %40, %41 : vector<4x128xf32>
    %43 = arith.mulf %42, %26 : vector<4x128xf32>
    %cst_18 = arith.constant -0.214598805 : f32
    %44 = vector.broadcast %cst_18 : f32 to vector<4x128xf32>
    %45 = arith.addf %43, %44 : vector<4x128xf32>
    %46 = arith.mulf %45, %26 : vector<4x128xf32>
    %cst_19 = arith.constant 1.57079625 : f32
    %47 = vector.broadcast %cst_19 : f32 to vector<4x128xf32>
    %48 = arith.addf %46, %47 : vector<4x128xf32>
    %cst_20 = arith.constant 1.000000e+00 : f32
    %49 = vector.broadcast %cst_20 : f32 to vector<4x128xf32>
    %50 = arith.subf %49, %26 : vector<4x128xf32>
    %cst_21 = arith.constant 0.000000e+00 : f32
    %51 = vector.broadcast %cst_21 : f32 to vector<4x128xf32>
    %52 = arith.maximumf %50, %51 : vector<4x128xf32>
    %53 = math.sqrt %52 : vector<4x128xf32>
    %54 = arith.mulf %53, %48 : vector<4x128xf32>
    %cst_22 = arith.constant 1.57079637 : f32
    %55 = vector.broadcast %cst_22 : f32 to vector<4x128xf32>
    %56 = arith.subf %55, %54 : vector<4x128xf32>
    %cst_23 = arith.constant 2.000000e+00 : f32
    %57 = vector.broadcast %cst_23 : f32 to vector<4x128xf32>
    %58 = arith.mulf %57, %56 : vector<4x128xf32>
    %59 = arith.mulf %58, %56 : vector<4x128xf32>
    %60 = tpu.iota {dimensions = array<i32: 1>} : vector<4x128xi32>
    %c128_i32 = arith.constant 128 : i32
    %61 = arith.muli %arg0, %c128_i32 : i32
    %62 = vector.broadcast %61 : i32 to vector<4x128xi32>
    %63 = arith.addi %60, %62 : vector<4x128xi32>
    %c48_i32 = arith.constant 48 : i32
    %64 = vector.broadcast %c48_i32 : i32 to vector<4x128xi32>
    %65 = arith.cmpi slt, %63, %64 : vector<4x128xi32>
    %cst_24 = arith.constant 0.000000e+00 : f32
    %66 = vector.broadcast %cst_24 : f32 to vector<4x128xf32>
    %67 = arith.select %65, %59, %66 : vector<4x128xi1>, vector<4x128xf32>
    %c0_25 = arith.constant 0 : index
    %c0_26 = arith.constant 0 : index
    %68 = vector.load %arg5[%c0_25, %c0_26] : memref<4x128xf32, #tpu.memory_space<vmem>>, vector<4x128xf32>
    %69 = arith.addf %68, %67 : vector<4x128xf32>
    %c0_27 = arith.constant 0 : index
    %c0_28 = arith.constant 0 : index
    %70 = vector.load %arg5[%c0_27, %c0_28] : memref<4x128xf32, #tpu.memory_space<vmem>>, vector<4x128xf32>
    tpu.vector_store %arg5[%c0_27, %c0_28], %69 {strides = array<i32>} : memref<4x128xf32, #tpu.memory_space<vmem>>, vector<4x128xf32>,
    %c0_i32_29 = arith.constant 0 : i32
    %71 = arith.cmpi eq, %arg0, %c0_i32_29 : i32
    %72 = arith.extui %71 : i1 to i32
    %c0_i32_30 = arith.constant 0 : i32
    %73 = arith.cmpi ne, %72, %c0_i32_30 : i32
    scf.if %73 {
      %c0_31 = arith.constant 0 : index
      %c0_32 = arith.constant 0 : index
      %74 = vector.load %arg5[%c0_31, %c0_32] : memref<4x128xf32, #tpu.memory_space<vmem>>, vector<4x128xf32>
      %cst_33 = arith.constant dense<0.000000e+00> : vector<4xf32>
      %75 = vector.multi_reduction <add>, %74, %cst_33 [1] : vector<4x128xf32> to vector<4xf32>
      %76 = vector.shape_cast %75 : vector<4xf32> to vector<4x1xf32>
      %cst_34 = arith.constant dense<0.000000e+00> : vector<1xf32>
      %77 = vector.multi_reduction <add>, %76, %cst_34 [0] : vector<4x1xf32> to vector<1xf32>
      %78 = vector.shape_cast %77 : vector<1xf32> to vector<1x1xf32>
      %c0_35 = arith.constant 0 : index
      %79 = memref.load %arg1[%c0_35] : memref<1xf32, #tpu.memory_space<smem>>
      %80 = vector.broadcast %79 : f32 to vector<1x1xf32>
      %81 = arith.mulf %80, %78 : vector<1x1xf32>
      %c0_36 = arith.constant 0 : index
      %c0_37 = arith.constant 0 : index
      %82 = vector.load %arg4[%c0_36, %c0_37] : memref<1x1xf32, #tpu.memory_space<vmem>>, vector<1x1xf32>
      tpu.vector_store %arg4[%c0_36, %c0_37], %81 {strides = array<i32>} : memref<1x1xf32, #tpu.memory_space<vmem>>, vector<1x1xf32>,
    } else {
    }
    return
  }
  func.func @transform_0(%arg0: i32) -> i32 {
    %c0_i32 = arith.constant 0 : i32
    %c0_i32_0 = arith.constant 0 : i32
    return %c0_i32 : i32
  }
  func.func @transform_1(%arg0: i32) -> (i32, i32) {
    %c0_i32 = arith.constant 0 : i32
    %c0_i32_0 = arith.constant 0 : i32
    return %arg0, %c0_i32 : i32, i32
  }
  func.func @transform_2(%arg0: i32) -> (i32, i32) {
    %c0_i32 = arith.constant 0 : i32
    %c0_i32_0 = arith.constant 0 : i32
    %c0_i32_1 = arith.constant 0 : i32
    return %c0_i32, %c0_i32_0 : i32, i32
  }
  func.func @transform_3(%arg0: i32) -> (i32, i32) {
    %c0_i32 = arith.constant 0 : i32
    %c0_i32_0 = arith.constant 0 : i32
    %c0_i32_1 = arith.constant 0 : i32
    return %c0_i32, %c0_i32_0 : i32, i32
  }
}

</mosaic_0001>

<bundles_post_ra>
// kernel: tpu_custom_call.1
= control target key start
LH: loop header
LB: loop body
LE: loop exit
PB: predicated region body
PF: predicated region fallthrough
CT: control target
= control target key end

     0   :  { %vm54_vm0 = vcmask 523264   ;;  %s697_s0 = inlined_call_operand.<no memory space> [shape: f32[1], index: 0, kind: input, shape index: {}]   ;;  %s698_s1 = inlined_call_operand.vmem [shape: f32[128,64], index: 1, kind: input, shape index: {}]   ;;  %s699_s2 = inlined_call_operand.vmem [shape: f32[4,64], index: 2, kind: input, shape index: {}]   ;;  %s700_s3 = inlined_call_operand.hbm [shape: f32[1,1], index: 3, kind: output, shape index: {}]  }
   0x1   :  { %v512_v0 = vld [vmem:[%s698_s1 + $0x78] sm:$0xff]  ;;  %v517_v1 = vld [vmem:[%s698_s1 + $0x70] sm:$0xff]  ;;  %v522_v2 = vld [vmem:[%s698_s1 + $0x68] sm:$0xff] }
   0x2   :  { %v53_v3 = vmul.f32 %v512_v0, %v512_v0  ;;  %v52_v4 = vmul.f32 %v517_v1, %v517_v1  ;;  %v51_v5 = vmul.f32 %v522_v2, %v522_v2  ;;  %v533_v6 = vld [vmem:[%s698_s1 + $0x60] sm:$0xff]  ;;  %v540_v8 = vld [vmem:[%s698_s1 + $0x58] sm:$0xff]  ;;  %v545_v9 = vld [vmem:[%s698_s1 + $0x50] sm:$0xff] }
   0x3   :  { %v50_v7 = vmul.f32 %v533_v6, %v533_v6  ;;  %v49_v14 = vmul.f32 %v540_v8, %v540_v8  ;;  %v48_v15 = vmul.f32 %v545_v9, %v545_v9 }
   0x4   :  { %v100_v10 = vsel %vm54_vm0, %v53_v3, 0.0  ;;  %v94_v11 = vsel %vm54_vm0, %v51_v5, 0.0  ;;  %v97_v12 = vsel %vm54_vm0, %v52_v4, 0.0 }
   0x5   :  { %101 = vadd.xlane.f32.xlu0 %v100_v10  ;;  %95 = vadd.xlane.f32.xlu1 %v94_v11  ;;  %v91_v13 = vsel %vm54_vm0, %v50_v7, 0.0 }
   0x6   :  { %9 = vsyncpa [#allocation5], 0  ;;  %v558_v16 = vld [vmem:[%s698_s1 + $0x48] sm:$0xff]  ;;  %v563_v17 = vld [vmem:[%s698_s1 + $0x40] sm:$0xff]  ;;  %v88_v18 = vsel %vm54_vm0, %v49_v14, 0.0  ;;  %v85_v19 = vsel %vm54_vm0, %v48_v15, 0.0 }
   0x7   :  { %v47_v20 = vmul.f32 %v558_v16, %v558_v16  ;;  %v46_v21 = vmul.f32 %v563_v17, %v563_v17  ;;  %v574_v22 = vld [vmem:[%s698_s1 + $0x38] sm:$0xff]  ;;  %v579_v23 = vld [vmem:[%s698_s1 + $0x30] sm:$0xff]  ;;  %v590_v28 = vld [vmem:[%s698_s1 + $0x28] sm:$0xff]  ;;  %v486_v46 = vmov 0.0   ;;  %vm487_vm1 = vmmov 0   ;;  %s488_s19 = smov [#allocation4]  }
   0x8   :  { %v45_v26 = vmul.f32 %v574_v22, %v574_v22  ;;  %v44_v27 = vmul.f32 %v579_v23, %v579_v23  ;;  %v595_v29 = vld [vmem:[%s698_s1 + $0x20] sm:$0xff]  ;;  %v43_v32 = vmul.f32 %v590_v28, %v590_v28  ;;  %v606_v34 = vld [vmem:[%s698_s1 + $0x18] sm:$0xff]  ;;  %v611_v35 = vld [vmem:[%s698_s1 + $0x10] sm:$0xff]  ;;  %390 = vmatprep.subr.mxu0 %v486_v46  ;;  %20 = vst [vmem:[#allocation2] sm:$0xf] %v486_v46  ;;  %vm326_vm7 = vcmask 1043456  }
   0x9   :  { %98 = vadd.xlane.f32.xlu0 %v97_v12  ;;  %92 = vadd.xlane.f32.xlu1 %v91_v13  ;;  %v82_v24 = vsel %vm54_vm0, %v47_v20, 0.0  ;;  %v79_v25 = vsel %vm54_vm0, %v46_v21, 0.0  ;;  %v42_v33 = vmul.f32 %v595_v29, %v595_v29  ;;  %v41_v38 = vmul.f32 %v606_v34, %v606_v34  ;;  %v622_v40 = vld [vmem:[%s698_s1 + $0x8] sm:$0xff]  ;;  %v627_v41 = vld [vmem:[%s698_s1] sm:$0xff]  ;;  %s348_s20 = sshll.u32 %s488_s19, 4  ;;  %s349_s20 = int_to_ptr.vmem [resolvable:$true] %s348_s20 }
   0xa   :  { %v76_v30 = vsel %vm54_vm0, %v45_v26, 0.0  ;;  %v73_v31 = vsel %vm54_vm0, %v44_v27, 0.0  ;;  %v70_v36 = vsel %vm54_vm0, %v43_v32, 0.0  ;;  %v40_v39 = vmul.f32 %v611_v35, %v611_v35  ;;  %422 = vmatprep.mubr.msk.f32.mxu0 %vm487_vm1, %v486_v46  ;;  %s464_s21 = scalar_lea.vmem %s349_s20, 16  ;;  %s468_s22 = scalar_lea.vmem %s349_s20, 32 }
   0xb   :  { %v67_v37 = vsel %vm54_vm0, %v42_v33, 0.0  ;;  %v64_v42 = vsel %vm54_vm0, %v41_v38, 0.0  ;;  %v39_v44 = vmul.f32 %v622_v40, %v622_v40  ;;  %v38_v45 = vmul.f32 %v627_v41, %v627_v41  ;;  %p465_p0 = scmp.ne.s32.totalorder %s349_s20, %s464_s21  ;;  %p469_p1 = scmp.lt.s32.totalorder %s349_s20, %s349_s20 }
   0xc   :  { %v61_v43 = vsel %vm54_vm0, %v40_v39, 0.0  ;;  %vm340_vm8 = vcmask 0   ;;  %p470_p2 = scmp.lt.s32.totalorder %s468_s22, %s464_s21 }
   0xd   :  { %89 = vadd.xlane.f32.xlu0 %v88_v18  ;;  %86 = vadd.xlane.f32.xlu1 %v85_v19  ;;  %v58_v47 = vsel %vm54_vm0, %v39_v44, 0.0  ;;  %v55_v48 = vsel %vm54_vm0, %v38_v45, 0.0 }
   0xe   :  { %p471_p3 = por %p470_p2, %p469_p1 }
  0x10   :  { %p472_p4 = pnand %p471_p3, %p465_p0 }
  0x11   :  { %83 = vadd.xlane.f32.xlu0 %v82_v24  ;;  %80 = vadd.xlane.f32.xlu1 %v79_v25 }
  0x15   :  { %77 = vadd.xlane.f32.xlu0 %v76_v30  ;;  %74 = vadd.xlane.f32.xlu1 %v73_v31 }
  0x19   :  { %71 = vadd.xlane.f32.xlu0 %v70_v36  ;;  %68 = vadd.xlane.f32.xlu1 %v67_v37 }
  0x1d   :  { %65 = vadd.xlane.f32.xlu0 %v64_v42  ;;  %62 = vadd.xlane.f32.xlu1 %v61_v43 }
  0x21   :  { %59 = vadd.xlane.f32.xlu0 %v58_v47  ;;  %56 = vadd.xlane.f32.xlu1 %v55_v48 }
  0x8e   :  { %v102_v49 = vpop.xlane.xlu0 %101  ;;  %v96_v50 = vpop.xlane.xlu1 %95 }
  0x8f   :  { %v118_v51 = vmax.f32 %v102_v49, 1e-24  ;;  %v116_v52 = vmax.f32 %v96_v50, 1e-24 }
  0x91   :  { %428 = vrsqrt.f32 %v118_v51 }
  0x92   :  { %v99_v53 = vpop.xlane.xlu0 %98  ;;  %v93_v54 = vpop.xlane.xlu1 %92  ;;  %430 = vrsqrt.f32 %v116_v52 }
  0x93   :  { %v117_v55 = vmax.f32 %v99_v53, 1e-24  ;;  %v115_v56 = vmax.f32 %v93_v54, 1e-24 }
  0x95   :  { %432 = vrsqrt.f32 %v117_v55 }
  0x96   :  { %v90_v57 = vpop.xlane.xlu0 %89  ;;  %434 = vrsqrt.f32 %v115_v56  ;;  %v87_v59 = vpop.xlane.xlu1 %86 }
  0x97   :  { %v114_v58 = vmax.f32 %v90_v57, 1e-24  ;;  %v113_v60 = vmax.f32 %v87_v59, 1e-24 }
  0x99   :  { %436 = vrsqrt.f32 %v114_v58 }
  0x9a   :  { %v84_v62 = vpop.xlane.xlu0 %83  ;;  %438 = vrsqrt.f32 %v113_v60  ;;  %v81_v7 = vpop.xlane.xlu1 %80 }
  0x9b   :  { %v112_v4 = vmax.f32 %v84_v62, 1e-24  ;;  %v111_v12 = vmax.f32 %v81_v7, 1e-24 }
  0x9d   :  { %440 = vrsqrt.f32 %v112_v4 }
  0x9e   :  { %v429_v61 = vpop.eup %428  ;;  %442 = vrsqrt.f32 %v111_v12 }
  0x9f   :  { %v150_v63 = vmul.f32 %v429_v61, %v512_v0  ;;  %v431_v3 = vpop.eup %430  ;;  %v78_v0 = vpop.xlane.xlu0 %77 }
  0xa0   :  { %v148_v11 = vmul.f32 %v431_v3, %v522_v2  ;;  %v110_v15 = vmax.f32 %v78_v0, 1e-24 }
  0xa1   :  { %391 = vmatpush3.xpose.msk.msra.mxu0 %vm54_vm0, %v150_v63 }
  0xa2   :  { %v433_v5 = vpop.eup %432  ;;  %392 = vmatprep.subr.mxu0 %v486_v46  ;;  %444 = vrsqrt.f32 %v110_v15 }
  0xa3   :  { %v149_v10 = vmul.f32 %v433_v5, %v517_v1  ;;  %v435_v13 = vpop.eup %434  ;;  %v75_v1 = vpop.xlane.xlu1 %74 }
  0xa4   :  { %v147_v14 = vmul.f32 %v435_v13, %v533_v6  ;;  %v109_v19 = vmax.f32 %v75_v1, 1e-24  ;;  %v72_v21 = vpop.xlane.xlu0 %71 }
  0xa5   :  { %393 = vmatpush3.xpose.msk.msra.mxu0 %vm54_vm0, %v149_v10  ;;  %v108_v24 = vmax.f32 %v72_v21, 1e-24 }
  0xa6   :  { %394 = vmatprep.subr.mxu0 %v486_v46  ;;  %v437_v18 = vpop.eup %436  ;;  %446 = vrsqrt.f32 %v109_v19 }
  0xa7   :  { %v146_v2 = vmul.f32 %v437_v18, %v540_v8  ;;  %v439_v20 = vpop.eup %438  ;;  %v69_v26 = vpop.xlane.xlu1 %68  ;;  %448 = vrsqrt.f32 %v108_v24  ;;  %v312_v24 = vlaneseq }
  0xa8   :  { %v145_v6 = vmul.f32 %v439_v20, %v545_v9  ;;  %v107_v27 = vmax.f32 %v69_v26, 1e-24  ;;  %v66_v31 = vpop.xlane.xlu0 %65 }
  0xa9   :  { %395 = vmatpush3.xpose.msk.msra.mxu0 %vm54_vm0, %v148_v11  ;;  %v106_v32 = vmax.f32 %v66_v31, 1e-24 }
  0xaa   :  { %396 = vmatprep.subr.mxu0 %v486_v46  ;;  %v441_v25 = vpop.eup %440  ;;  %450 = vrsqrt.f32 %v107_v27  ;;  %v313_v27 = vand.u32 127, %v312_v24 }
  0xab   :  { %v144_v8 = vmul.f32 %v441_v25, %v558_v16  ;;  %v443_v30 = vpop.eup %442  ;;  %v63_v36 = vpop.xlane.xlu1 %62  ;;  %452 = vrsqrt.f32 %v106_v32  ;;  %v319_v32 = vld [vmem:[#allocation2] sm:$0xf] }
  0xac   :  { %v143_v9 = vmul.f32 %v443_v30, %v563_v17  ;;  %v105_v37 = vmax.f32 %v63_v36, 1e-24  ;;  %v60_v39 = vpop.xlane.xlu0 %59  ;;  %vm317_vm6 = vcmp.lt.s32.totalorder %v313_v27, 48 }
  0xad   :  { %397 = vmatpush3.xpose.msk.msra.mxu0 %vm54_vm0, %v147_v14  ;;  %v104_v42 = vmax.f32 %v60_v39, 1e-24 }
  0xae   :  { %398 = vmatprep.subr.mxu0 %v486_v46  ;;  %454 = vrsqrt.f32 %v105_v37 }
  0xaf   :  { %v445_v33 = vpop.eup %444  ;;  %v57_v44 = vpop.xlane.xlu1 %56  ;;  %456 = vrsqrt.f32 %v104_v42 }
  0xb0   :  { %v142_v16 = vmul.f32 %v445_v33, %v574_v22  ;;  %v103_v45 = vmax.f32 %v57_v44, 1e-24 }
  0xb1   :  { %399 = vmatpush3.xpose.msk.msra.mxu0 %vm54_vm0, %v146_v2 }
  0xb2   :  { %400 = vmatprep.subr.mxu0 %v486_v46  ;;  %458 = vrsqrt.f32 %v103_v45  ;;  %v338_v45 = vstv %s697_s0 }
  0xb3   :  { %v447_v38 = vpop.eup %446 }
  0xb4   :  { %v141_v17 = vmul.f32 %v447_v38, %v579_v23  ;;  %v449_v43 = vpop.eup %448 }
  0xb5   :  { %401 = vmatpush3.xpose.msk.msra.mxu0 %vm54_vm0, %v145_v6  ;;  %v140_v22 = vmul.f32 %v449_v43, %v590_v28 }
  0xb6   :  { %402 = vmatprep.subr.mxu0 %v486_v46 }
  0xb7   :  { %v451_v47 = vpop.eup %450 }
  0xb8   :  { %v139_v48 = vmul.f32 %v451_v47, %v595_v29  ;;  %v453_v23 = vpop.eup %452 }
  0xb9   :  { %403 = vmatpush3.xpose.msk.msra.mxu0 %vm54_vm0, %v144_v8  ;;  %v138_v49 = vmul.f32 %v453_v23, %v606_v34 }
  0xba   :  { %404 = vmatprep.subr.mxu0 %v486_v46 }
  0xbb   :  { %v455_v50 = vpop.eup %454 }
  0xbc   :  { %v137_v28 = vmul.f32 %v455_v50, %v611_v35  ;;  %v457_v51 = vpop.eup %456  ;;  %v37_v35 = vld [vmem:[%s699_s2] sm:$0xf] }
  0xbd   :  { %405 = vmatpush3.xpose.msk.msra.mxu0 %vm54_vm0, %v143_v9  ;;  %v136_v29 = vmul.f32 %v457_v51, %v622_v40 }
  0xbe   :  { %406 = vmatprep.subr.mxu0 %v486_v46 }
  0xbf   :  { %v459_v52 = vpop.eup %458 }
  0xc0   :  { %v135_v34 = vmul.f32 %v459_v52, %v627_v41 }
  0xc1   :  { %407 = vmatpush3.xpose.msk.msra.mxu0 %vm54_vm0, %v142_v16 }
  0xc2   :  { %408 = vmatprep.subr.mxu0 %v486_v46 }
  0xc5   :  { %409 = vmatpush3.xpose.msk.msra.mxu0 %vm54_vm0, %v141_v17 }
  0xc6   :  { %410 = vmatprep.subr.mxu0 %v486_v46 }
  0xc9   :  { %411 = vmatpush3.xpose.msk.msra.mxu0 %vm54_vm0, %v140_v22 }
  0xca   :  { %412 = vmatprep.subr.mxu0 %v486_v46 }
  0xcd   :  { %413 = vmatpush3.xpose.msk.msra.mxu0 %vm54_vm0, %v139_v48 }
  0xce   :  { %414 = vmatprep.subr.mxu0 %v486_v46 }
  0xd1   :  { %415 = vmatpush3.xpose.msk.msra.mxu0 %vm54_vm0, %v138_v49 }
  0xd2   :  { %416 = vmatprep.subr.mxu0 %v486_v46 }
  0xd5   :  { %417 = vmatpush3.xpose.msk.msra.mxu0 %vm54_vm0, %v137_v28 }
  0xd6   :  { %418 = vmatprep.subr.mxu0 %v486_v46 }
  0xd9   :  { %419 = vmatpush3.xpose.msk.msra.mxu0 %vm54_vm0, %v136_v29 }
  0xda   :  { %420 = vmatprep.subr.mxu0 %v486_v46 }
  0xdd   :  { %421 = vmatpush3.xpose.msk.msra.mxu0 %vm54_vm0, %v135_v34 }
  0xe0   :  { %423 = vmatmul.mubr.msk.f32.vlgmr.msra.gmra.mxu0 %vm54_vm0, %v37_v35 }
 0x1a0   :  { %v268_v53 = vpop.f32.mrf.mxu0 }
 0x1a1   :  { %v272_v54 = vmul.f32 2.0, %v268_v53 }
 0x1a2   :  { %v424_v40 = vpop.f32.mrf.mxu0 }
 0x1a3   :  { %v273_v55 = vsub.f32 2.0, %v272_v54 }
 0x1a5   :  { %v274_v56 = vmax.f32 %v273_v55, 0.0 }
 0x1a7   :  { %v275_v57 = vmin.f32 %v274_v56, 4.0 }
 0x1a9   :  { %460 = vrsqrt.f32 %v275_v57  ;;  %vm278_vm2 = vcmp.eq.f32.partialorder %v275_v57, inf  ;;  %v281_v41 = vand.u32 2147483648, %v275_v57  ;;  %vm280_vm3 = vcmp.eq.f32.partialorder %v275_v57, 0.0 }
 0x1b6   :  { %v461_v58 = vpop.eup %460 }
 0x1b7   :  { %v277_v59 = vmul.f32 %v461_v58, %v275_v57 }
 0x1b9   :  { %v279_v46 = vsel %vm278_vm2, %v275_v57, %v277_v59 }
 0x1ba   :  { %v282_v60 = vsel %vm280_vm3, %v281_v41, %v279_v46 }
 0x1bb   :  { %v283_v61 = vmul.f32 0.5, %v282_v60 }
 0x1bd   :  { %v284_v62 = vmin.f32 %v283_v61, 1.0 }
 0x1bf   :  { %v285_v63 = vmul.f32 -0.0012624911, %v284_v62  ;;  %v299_v3 = vsub.f32 1.0, %v284_v62 }
 0x1c1   :  { %v286_v4 = vadd.f32 0.00667009, %v285_v63  ;;  %v300_v5 = vmax.f32 %v299_v3, 0.0 }
 0x1c3   :  { %v287_v7 = vmul.f32 %v286_v4, %v284_v62  ;;  %462 = vrsqrt.f32 %v300_v5  ;;  %vm303_vm4 = vcmp.eq.f32.partialorder %v300_v5, inf  ;;  %v306_v6 = vand.u32 2147483648, %v300_v5 }
 0x1c4   :  { %vm305_vm5 = vcmp.eq.f32.partialorder %v300_v5, 0.0 }
 0x1c5   :  { %v288_v10 = vadd.f32 -0.017088126, %v287_v7 }
 0x1c7   :  { %v289_v11 = vmul.f32 %v288_v10, %v284_v62 }
 0x1c9   :  { %v290_v12 = vadd.f32 0.03089188, %v289_v11 }
 0x1cb   :  { %v291_v13 = vmul.f32 %v290_v12, %v284_v62 }
 0x1cd   :  { %v292_v0 = vadd.f32 -0.050174303, %v291_v13 }
 0x1cf   :  { %v293_v14 = vmul.f32 %v292_v0, %v284_v62 }
 0x1d0   :  { %v463_v15 = vpop.eup %462 }
 0x1d1   :  { %v294_v18 = vadd.f32 0.08897899, %v293_v14  ;;  %v302_v2 = vmul.f32 %v463_v15, %v300_v5 }
 0x1d3   :  { %v295_v1 = vmul.f32 %v294_v18, %v284_v62  ;;  %v304_v21 = vsel %vm303_vm4, %v300_v5, %v302_v2 }
 0x1d4   :  { %v307_v26 = vsel %vm305_vm5, %v306_v6, %v304_v21 }
 0x1d5   :  { %v296_v19 = vadd.f32 -0.2145988, %v295_v1 }
 0x1d7   :  { %v297_v20 = vmul.f32 %v296_v19, %v284_v62 }
 0x1d9   :  { %v298_v25 = vadd.f32 1.5707963, %v297_v20 }
 0x1db   :  { %v308_v8 = vmul.f32 %v307_v26, %v298_v25 }
 0x1dd   :  { %v309_v30 = vsub.f32 1.5707964, %v308_v8 }
 0x1df   :  { %v310_v31 = vmul.f32 2.0, %v309_v30 }
 0x1e1   :  { %v311_v9 = vmul.f32 %v310_v31, %v309_v30 }
 0x1e3   :  { %v318_v33 = vsel %vm317_vm6, %v311_v9, 0.0 }
 0x1e4   :  { %v320_v36 = vadd.f32 %v319_v32, %v318_v33 }
 0x1e6   :  { %321 = vst [vmem:[#allocation2] sm:$0xf] %v320_v36 }
 0x1ed   :  { %v325_v16 = vld [vmem:[#allocation2] sm:$0xf] }
 0x1ee   :  { %v327_v37 = vsel %vm326_vm7, %v325_v16, 0.0 }
 0x1ef   :  { %328 = vadd.xlane.f32.xlu0 %v327_v37 }
 0x278   :  { %v329_v38 = vpop.xlane.xlu0 %328 }
 0x279   :  { %v330_v39 = vsel %vm326_vm7, %v329_v38, 0.0 }
 0x27a   :  { %v331_v17 = vrot.slane %v330_v39, 4 }
 0x27c   :  { %v332_v42 = vadd.f32 %v331_v17, %v330_v39 }
 0x27e   :  { %v333_v43 = vrot.slane %v332_v42, 2 }
 0x280   :  { %v334_v44 = vadd.f32 %v333_v43, %v332_v42 }
 0x282   :  { %v335_v22 = vrot.slane %v334_v44, 1 }
 0x284   :  { %v336_v47 = vadd.f32 %v335_v22, %v334_v44 }
 0x286   :  { %v339_v48 = vmul.f32 %v338_v45, %v336_v47 }
 0x288   :  { %341 = vst.msk [vmem:[#allocation4] sm:$0x1] %vm340_vm8, %v339_v48 }
 0x289   :  { %475 = shalt.err (!%p472_p4)
}
 0x28a   :  { %351 = dma.vmem_to_hbm [thread:$0]  %s349_s20, 16, %s700_s3, [#allocation5]  }
 0x28b   :  { %484 = dma.done.wait [#allocation5], 16  }
 0x28c   :  { %485 = vsyncadd [#allocation5], 4294967280 }
 0x28d   :  { %355 = vsyncpa [#allocation5], 1 }

</bundles_post_ra>
